<compile_context>
chip_gen: v7x
topology: tpu7x:2x2x1
jax: 0.10.0
libtpu: 0.0.40
codegen_flags: <defaults>
</compile_context>

<pallas_src>
import functools

import jax
import jax.numpy as jnp
from jax import lax
from jax.experimental import pallas as pl
from jax.experimental.pallas import tpu as pltpu

_LANES = 128
_SUBLANES = 8
_TILE_ELEMS = _SUBLANES * _LANES      # 1024 elements = one f32 vreg
_MAX_BLOCK_ROWS = 4096                # 4096 x 128 f32 = 2 MiB / input / buffer


def _tensorcores_per_chip() -> int:
    """Best-effort TensorCores-per-chip: v5e/v6e -> 1, v4/v5p/v7x -> 2."""
    try:
        kind = jax.devices()[0].device_kind.lower()
    except Exception:  # pragma: no cover - defensive
        return 2
    if "lite" in kind or "v5e" in kind or "v6e" in kind:
        return 1
    return 2


def _rmse_partial_kernel(yh_ref, y_ref, out_ref, acc_ref, *,
                         block_rows, valid_rows):
    """Per-core partial sum of squared differences.

    Grid = (core, step).  Each step folds one (block_rows, 128) block into a
    single (8, 128) VMEM accumulator (leading-axis sum = pure VPU vreg adds).
    The cross-lane reduce runs exactly once per core, on its last step.
    """
    c = pl.program_id(0)
    i = pl.program_id(1)
    steps = pl.num_programs(1)

    @pl.when(i == 0)
    def _():
        acc_ref[...] = jnp.zeros_like(acc_ref)

    # Logical position of this block in the global row stream.  Only the
    # ragged edge block and any clamped duplicate block (core axis wider than
    # the block count) contain invalid rows and need masking.
    start_row = (c * steps + i) * block_rows
    needs_mask = start_row + block_rows > valid_rows

    @pl.when(jnp.logical_not(needs_mask))
    def _():
        # Steady-state fast path: no iota / compare / select.
        d = yh_ref[...].astype(jnp.float32) - y_ref[...].astype(jnp.float32)
        acc_ref[...] += jnp.sum(
            (d * d).reshape(-1, _SUBLANES, _LANES), axis=0)

    @pl.when(needs_mask)
    def _():
        row = start_row + lax.broadcasted_iota(
            jnp.int32, (block_rows, _LANES), 0)
        mask = row < valid_rows
        d = yh_ref[...].astype(jnp.float32) - y_ref[...].astype(jnp.float32)
        d = jnp.where(mask, d, 0.0)     # mask BEFORE squaring (no NaN*0 leak)
        acc_ref[...] += jnp.sum(
            (d * d).reshape(-1, _SUBLANES, _LANES), axis=0)

    @pl.when(i == steps - 1)
    def _():
        out_ref[0, 0] = jnp.sum(acc_ref[...])   # single XLU reduce per core


def rmse_loss(y_hat: jax.Array, y: jax.Array, eps: float = 1e-08) -> jax.Array:
    """Pallas implementation of RMSELoss.forward: sqrt(mean((y_hat-y)^2) + eps)."""
    assert y_hat.shape == y.shape, "MSELoss requires matching shapes"
    n = y_hat.size

    yh = jnp.ravel(y_hat)
    yv = jnp.ravel(y)

    # Split at a 1024-element (8 x 128) boundary: the kernel gets rows that
    # are always a multiple of 8; the tiny tail stays in pure JAX (no full
    # array pad / copy pass over HBM).
    n_main = (n // _TILE_ELEMS) * _TILE_ELEMS
    rows = n_main // _LANES

    if n_main < n:
        dt = yh[n_main:].astype(jnp.float32) - yv[n_main:].astype(jnp.float32)
        tail_sq = jnp.sum(dt * dt)
    else:
        tail_sq = jnp.float32(0.0)

    if rows == 0:
        total_sq = tail_sq
    else:
        # rows % 8 == 0, so block_rows % 8 == 0 and block_rows <= rows.
        block_rows = min(_MAX_BLOCK_ROWS, rows)
        total_blocks = pl.cdiv(rows, block_rows)
        num_cores = min(_tensorcores_per_chip(), total_blocks)
        steps = pl.cdiv(total_blocks, num_cores)

        def in_map(c, i):
            # Clamp so the DMA never walks past the array; logically
            # out-of-range (duplicated) blocks are zeroed by the row mask.
            return (jnp.minimum(c * steps + i, total_blocks - 1), 0)

        kernel = functools.partial(
            _rmse_partial_kernel, block_rows=block_rows, valid_rows=rows)

        yh2 = yh[:n_main].reshape(rows, _LANES)   # no-op when n is aligned
        yv2 = yv[:n_main].reshape(rows, _LANES)

        partials = pl.pallas_call(
            kernel,
            out_shape=jax.ShapeDtypeStruct((num_cores, 1), jnp.float32),
            grid_spec=pltpu.PrefetchScalarGridSpec(
                num_scalar_prefetch=0,
                grid=(num_cores, steps),
                in_specs=[
                    pl.BlockSpec((block_rows, _LANES), in_map),
                    pl.BlockSpec((block_rows, _LANES), in_map),
                ],
                out_specs=pl.BlockSpec(
                    (1, 1), lambda c, i: (c, 0), memory_space=pltpu.SMEM),
                scratch_shapes=[pltpu.VMEM((_SUBLANES, _LANES), jnp.float32)],
            ),
            compiler_params=pltpu.CompilerParams(
                dimension_semantics=("parallel", "arbitrary")),
        )(yh2, yv2)

        total_sq = jnp.sum(partials) + tail_sq

    # Divide by the TRUE element count; eps goes inside the sqrt, matching
    # torch: sqrt(MSELoss(y_hat, y) + eps).  Returns a 0-d f32 scalar.
    return jnp.sqrt(total_sq / jnp.float32(n) + jnp.float32(eps))


if __name__ == "__main__":
    key = jax.random.PRNGKey(0)
    k1, k2, k3, k4 = jax.random.split(key, 4)

    # Regression-style predictions/targets: (batch=2, channels=4, 16, 16).
    shape = (2, 4, 16, 16)
    y_hat = jax.random.normal(k1, shape, dtype=jnp.float32)
    y = jax.random.normal(k2, shape, dtype=jnp.float32)
    loss = rmse_loss(y_hat, y)
    jax.block_until_ready(loss)
    ref = jnp.sqrt(jnp.mean((y_hat - y) ** 2) + 1e-08)
    assert jnp.allclose(loss, ref, rtol=1e-5, atol=1e-6), (loss, ref)

    # Ragged element count: kernel handles the aligned prefix, JAX the tail.
    shape2 = (3, 700)   # 2100 elems = 2048 through the kernel + 52-elem tail
    a = jax.random.normal(k3, shape2, dtype=jnp.float32)
    b = jax.random.normal(k4, shape2, dtype=jnp.float32)
    loss2 = rmse_loss(a, b)
    jax.block_until_ready(loss2)
    ref2 = jnp.sqrt(jnp.mean((a - b) ** 2) + 1e-08)
    assert jnp.allclose(loss2, ref2, rtol=1e-5, atol=1e-6), (loss2, ref2)

    print("KERNEL_OK")
</pallas_src>

<mosaic_0001>
module attributes {stable_mosaic.version = 11 : i64} {
  func.func @_rmse_partial_kernel(%arg0: i32, %arg1: i32, %arg2: memref<16x128xf32, #tpu.memory_space<vmem>>, %arg3: memref<16x128xf32, #tpu.memory_space<vmem>>, %arg4: memref<1x1xf32, #tpu.memory_space<smem>>, %arg5: memref<8x128xf32, #tpu.memory_space<vmem>>) attributes {dimension_semantics = [#tpu.dimension_semantics<parallel>, #tpu.dimension_semantics<arbitrary>], iteration_bounds = array<i64: 1, 1>, scalar_prefetch = 0 : i64, scratch_operands = 1 : i64, tpu.core_type = #tpu.core_type<tc>, window_params = [{transform_indices = @transform_0, window_bounds = array<i64: 16, 128>}, {transform_indices = @transform_1, window_bounds = array<i64: 16, 128>}, {transform_indices = @transform_2, window_bounds = array<i64: 1, 1>}]} {
    %c0_i32 = arith.constant 0 : i32
    %0 = arith.cmpi eq, %arg1, %c0_i32 : i32
    %1 = arith.extui %0 : i1 to i32
    %c0_i32_0 = arith.constant 0 : i32
    %2 = arith.cmpi ne, %1, %c0_i32_0 : i32
    scf.if %2 {
      %cst = arith.constant 0.000000e+00 : f32
      %16 = vector.broadcast %cst : f32 to vector<8x128xf32>
      %c0 = arith.constant 0 : index
      %c0_7 = arith.constant 0 : index
      %17 = vector.load %arg5[%c0, %c0_7] : memref<8x128xf32, #tpu.memory_space<vmem>>, vector<8x128xf32>
      tpu.vector_store %arg5[%c0, %c0_7], %16 {strides = array<i32>} : memref<8x128xf32, #tpu.memory_space<vmem>>, vector<8x128xf32>,
    } else {
    }
    %c1_i32 = arith.constant 1 : i32
    %3 = arith.muli %arg0, %c1_i32 : i32
    %4 = arith.addi %3, %arg1 : i32
    %c16_i32 = arith.constant 16 : i32
    %5 = arith.muli %4, %c16_i32 : i32
    %c16_i32_1 = arith.constant 16 : i32
    %6 = arith.addi %5, %c16_i32_1 : i32
    %c16_i32_2 = arith.constant 16 : i32
    %7 = arith.cmpi sgt, %6, %c16_i32_2 : i32
    %true = arith.constant true
    %8 = arith.xori %7, %true : i1
    %9 = arith.extui %8 : i1 to i32
    %c0_i32_3 = arith.constant 0 : i32
    %10 = arith.cmpi ne, %9, %c0_i32_3 : i32
    scf.if %10 {
      %c0 = arith.constant 0 : index
      %c0_7 = arith.constant 0 : index
      %16 = vector.load %arg2[%c0, %c0_7] : memref<16x128xf32, #tpu.memory_space<vmem>>, vector<16x128xf32>
      %c0_8 = arith.constant 0 : index
      %c0_9 = arith.constant 0 : index
      %17 = vector.load %arg3[%c0_8, %c0_9] : memref<16x128xf32, #tpu.memory_space<vmem>>, vector<16x128xf32>
      %18 = arith.subf %16, %17 : vector<16x128xf32>
      %c0_10 = arith.constant 0 : index
      %c0_11 = arith.constant 0 : index
      %19 = vector.load %arg5[%c0_10, %c0_11] : memref<8x128xf32, #tpu.memory_space<vmem>>, vector<8x128xf32>
      %20 = arith.mulf %18, %18 : vector<16x128xf32>
      %21 = vector.shape_cast %20 : vector<16x128xf32> to vector<2x8x128xf32>
      %cst = arith.constant dense<0.000000e+00> : vector<8x128xf32>
      %22 = vector.multi_reduction <add>, %21, %cst [0] : vector<2x8x128xf32> to vector<8x128xf32>
      %23 = arith.addf %19, %22 : vector<8x128xf32>
      %c0_12 = arith.constant 0 : index
      %c0_13 = arith.constant 0 : index
      %24 = vector.load %arg5[%c0_12, %c0_13] : memref<8x128xf32, #tpu.memory_space<vmem>>, vector<8x128xf32>
      tpu.vector_store %arg5[%c0_12, %c0_13], %23 {strides = array<i32>} : memref<8x128xf32, #tpu.memory_space<vmem>>, vector<8x128xf32>,
    } else {
    }
    %11 = arith.extui %7 : i1 to i32
    %c0_i32_4 = arith.constant 0 : i32
    %12 = arith.cmpi ne, %11, %c0_i32_4 : i32
    scf.if %12 {
      %16 = tpu.iota {dimensions = array<i32: 0>} : vector<16x128xi32>
      %17 = vector.broadcast %5 : i32 to vector<16x128xi32>
      %18 = arith.addi %17, %16 : vector<16x128xi32>
      %c16_i32_7 = arith.constant 16 : i32
      %19 = vector.broadcast %c16_i32_7 : i32 to vector<16x128xi32>
      %20 = arith.cmpi slt, %18, %19 : vector<16x128xi32>
      %c0 = arith.constant 0 : index
      %c0_8 = arith.constant 0 : index
      %21 = vector.load %arg2[%c0, %c0_8] : memref<16x128xf32, #tpu.memory_space<vmem>>, vector<16x128xf32>
      %c0_9 = arith.constant 0 : index
      %c0_10 = arith.constant 0 : index
      %22 = vector.load %arg3[%c0_9, %c0_10] : memref<16x128xf32, #tpu.memory_space<vmem>>, vector<16x128xf32>
      %23 = arith.subf %21, %22 : vector<16x128xf32>
      %cst = arith.constant 0.000000e+00 : f32
      %24 = vector.broadcast %cst : f32 to vector<16x128xf32>
      %25 = arith.select %20, %23, %24 : vector<16x128xi1>, vector<16x128xf32>
      %c0_11 = arith.constant 0 : index
      %c0_12 = arith.constant 0 : index
      %26 = vector.load %arg5[%c0_11, %c0_12] : memref<8x128xf32, #tpu.memory_space<vmem>>, vector<8x128xf32>
      %27 = arith.mulf %25, %25 : vector<16x128xf32>
      %28 = vector.shape_cast %27 : vector<16x128xf32> to vector<2x8x128xf32>
      %cst_13 = arith.constant dense<0.000000e+00> : vector<8x128xf32>
      %29 = vector.multi_reduction <add>, %28, %cst_13 [0] : vector<2x8x128xf32> to vector<8x128xf32>
      %30 = arith.addf %26, %29 : vector<8x128xf32>
      %c0_14 = arith.constant 0 : index
      %c0_15 = arith.constant 0 : index
      %31 = vector.load %arg5[%c0_14, %c0_15] : memref<8x128xf32, #tpu.memory_space<vmem>>, vector<8x128xf32>
      tpu.vector_store %arg5[%c0_14, %c0_15], %30 {strides = array<i32>} : memref<8x128xf32, #tpu.memory_space<vmem>>, vector<8x128xf32>,
    } else {
    }
    %c0_i32_5 = arith.constant 0 : i32
    %13 = arith.cmpi eq, %arg1, %c0_i32_5 : i32
    %14 = arith.extui %13 : i1 to i32
    %c0_i32_6 = arith.constant 0 : i32
    %15 = arith.cmpi ne, %14, %c0_i32_6 : i32
    scf.if %15 {
      %c0 = arith.constant 0 : index
      %c0_7 = arith.constant 0 : index
      %16 = vector.load %arg5[%c0, %c0_7] : memref<8x128xf32, #tpu.memory_space<vmem>>, vector<8x128xf32>
      %17 = vector.shape_cast %16 : vector<8x128xf32> to vector<1x8x128xf32>
      %cst = arith.constant dense<0.000000e+00> : vector<1xf32>
      %18 = vector.multi_reduction <add>, %17, %cst [1, 2] : vector<1x8x128xf32> to vector<1xf32>
      %19 = vector.shape_cast %18 : vector<1xf32> to vector<1x1x1xf32>
      %20 = vector.extract %19[0, 0, 0] : f32 from vector<1x1x1xf32>
      %c0_8 = arith.constant 0 : index
      %c0_9 = arith.constant 0 : index
      %21 = memref.load %arg4[%c0_8, %c0_9] : memref<1x1xf32, #tpu.memory_space<smem>>
      memref.store %20, %arg4[%c0_8, %c0_9] : memref<1x1xf32, #tpu.memory_space<smem>>
    } else {
    }
    return
  }
  func.func @transform_0(%arg0: i32, %arg1: i32) -> (i32, i32) {
    %c1_i32 = arith.constant 1 : i32
    %0 = arith.muli %arg0, %c1_i32 : i32
    %1 = arith.addi %0, %arg1 : i32
    %c0_i32 = arith.constant 0 : i32
    %2 = arith.minsi %1, %c0_i32 : i32
    %c0_i32_0 = arith.constant 0 : i32
    %c0_i32_1 = arith.constant 0 : i32
    return %2, %c0_i32_0 : i32, i32
  }
  func.func @transform_1(%arg0: i32, %arg1: i32) -> (i32, i32) {
    %c1_i32 = arith.constant 1 : i32
    %0 = arith.muli %arg0, %c1_i32 : i32
    %1 = arith.addi %0, %arg1 : i32
    %c0_i32 = arith.constant 0 : i32
    %2 = arith.minsi %1, %c0_i32 : i32
    %c0_i32_0 = arith.constant 0 : i32
    %c0_i32_1 = arith.constant 0 : i32
    return %2, %c0_i32_0 : i32, i32
  }
  func.func @transform_2(%arg0: i32, %arg1: i32) -> (i32, i32) {
    %c0_i32 = arith.constant 0 : i32
    %c0_i32_0 = arith.constant 0 : i32
    return %arg0, %c0_i32 : i32, i32
  }
}

</mosaic_0001>

<bundles_post_ra>
// kernel: tpu_custom_call.1
= control target key start
LH: loop header
LB: loop body
LE: loop exit
PB: predicated region body
PF: predicated region fallthrough
CT: control target
= control target key end

     0   :  { %7 = vsyncpa [#allocation4], 0  ;;  %s267_s0 = inlined_call_operand.hbm [shape: f32[16,128], index: 0, kind: input, shape index: {}]   ;;  %s268_s1 = inlined_call_operand.hbm [shape: f32[16,128], index: 1, kind: input, shape index: {}]   ;;  %s269_s2 = inlined_call_operand.hbm [shape: f32[1,1], index: 2, kind: output, shape index: {}]  }
   0x1   :  { %8 = vsyncpa [#allocation7], 0 }
   0x2   :  { %9 = vsyncpa [#allocation5], 0  ;;  %s211_s9 = smov [#allocation3]   ;;  %s151_s13 = scalar_lea.hbm %s267_s0, 256 }
   0x3   :  { %s21_s10 = sshll.u32 %s211_s9, 4  ;;  %p152_p0 = scmp.ne.s32.totalorder %s267_s0, %s151_s13  ;;  %s22_s10 = int_to_ptr.vmem [resolvable:$true] %s21_s10 }
   0x4   :  { %p155_p1 = scmp.lt.u32.totalorder %s151_s13, %s267_s0 }
   0x6   :  { %p157_p2 = pnand %p155_p1, %p152_p0 }
   0x8   :  { %160 = shalt.err (!%p157_p2)
}
   0x9   :  { %s161_s18 = scalar_lea.vmem %s22_s10, 256  ;;  %p166_p4 = scmp.lt.s32.totalorder %s22_s10, %s22_s10 }
   0xa   :  { %p162_p3 = scmp.ne.s32.totalorder %s22_s10, %s161_s18  ;;  %p167_p5 = scmp.lt.s32.totalorder %s161_s18, %s161_s18 }
   0xc   :  { %p168_p6 = por %p167_p5, %p166_p4 }
   0xe   :  { %p169_p7 = pnand %p168_p6, %p162_p3 }
  0x10   :  { %172 = shalt.err (!%p169_p7)
}
  0x11   :  { %s212_s19 = smov 128   ;;  %s213_s20 = smov 8  }
  0x12   :  { %27 = dma.hbm_to_vmem [thread:$0]  %s267_s0, 256, %s22_s10, [#allocation4], %s212_s19, %s212_s19, %s213_s20  }
  0x13   :  { %s214_s23 = smov [#allocation6]   ;;  %s173_s27 = scalar_lea.hbm %s268_s1, 256 }
  0x14   :  { %s39_s24 = sshll.u32 %s214_s23, 4  ;;  %p174_p8 = scmp.ne.s32.totalorder %s268_s1, %s173_s27  ;;  %s40_s24 = int_to_ptr.vmem [resolvable:$true] %s39_s24 }
  0x15   :  { %p177_p9 = scmp.lt.u32.totalorder %s173_s27, %s268_s1 }
  0x17   :  { %p179_p10 = pnand %p177_p9, %p174_p8 }
  0x19   :  { %182 = shalt.err (!%p179_p10)
}
  0x1a   :  { %s183_s4 = scalar_lea.vmem %s40_s24, 256  ;;  %p188_p12 = scmp.lt.s32.totalorder %s40_s24, %s40_s24 }
  0x1b   :  { %p184_p11 = scmp.ne.s32.totalorder %s40_s24, %s183_s4  ;;  %p189_p13 = scmp.lt.s32.totalorder %s183_s4, %s183_s4 }
  0x1d   :  { %p190_p0 = por %p189_p13, %p188_p12 }
  0x1f   :  { %p191_p1 = pnand %p190_p0, %p184_p11 }
  0x21   :  { %194 = shalt.err (!%p191_p1)
}
  0x22   :  { %45 = dma.hbm_to_vmem [thread:$0]  %s268_s1, 256, %s40_s24, [#allocation7], %s212_s19, %s212_s19, %s213_s20  }
  0x23   :  { %205 = dma.done.wait [#allocation4], 256  }
  0x24   :  { %206 = vsyncadd [#allocation4], 4294967040 }
  0x25   :  { %207 = dma.done.wait [#allocation7], 256  }
  0x26   :  { %208 = vsyncadd [#allocation7], 4294967040  ;;  %v73_v0 = vld [vmem:[#allocation3] sm:$0xff]  ;;  %v74_v1 = vld [vmem:[#allocation3 + $0x8] sm:$0xff]  ;;  %s195_s8 = scalar_lea.hbm %s269_s2, 16 }
  0x27   :  { %v75_v2 = vld [vmem:[#allocation6] sm:$0xff]  ;;  %v76_v3 = vld [vmem:[#allocation6 + $0x8] sm:$0xff]  ;;  %p196_p2 = scmp.ne.s32.totalorder %s269_s2, %s195_s8  ;;  %p199_p3 = scmp.lt.u32.totalorder %s195_s8, %s269_s2 }
  0x28   :  { %v77_v4 = vsub.f32 %v73_v0, %v75_v2  ;;  %v78_v5 = vsub.f32 %v74_v1, %v76_v3 }
  0x29   :  { %p201_p4 = pnand %p199_p3, %p196_p2 }
  0x2a   :  { %v80_v6 = vmul.f32 %v77_v4, %v77_v4  ;;  %v81_v7 = vmul.f32 %v78_v5, %v78_v5 }
  0x2c   :  { %v82_v8 = vadd.f32 %v81_v7, %v80_v6 }
  0x2e   :  { %114 = vadd.xlane.f32.xlu0 %v82_v8 }
  0xbb   :  { %v115_v9 = vpop.xlane.xlu0 %114 }
  0xbc   :  { %v116_v10 = vrot.slane %v115_v9, 4 }
  0xbe   :  { %v117_v11 = vadd.f32 %v116_v10, %v115_v9 }
  0xc0   :  { %v118_v12 = vrot.slane %v117_v11, 2 }
  0xc2   :  { %v119_v13 = vadd.f32 %v118_v12, %v117_v11 }
  0xc4   :  { %v120_v14 = vrot.slane %v119_v13, 1 }
  0xc6   :  { %v121_v15 = vadd.f32 %v120_v14, %v119_v13 }
  0xc8   :  { %144 = vpush %v121_v15 }
  0xf9   :  { %s145_s1 = spop %144 }
  0xfa   :  { %124 = sst [smem:[#allocation8]] %s145_s1 }
  0xfb   :  { %204 = shalt.err (!%p201_p4)
}
  0xfc   :  { %s215_s13 = smov [#allocation8]  }
  0xfd   :  { %132 = dma.smem_to_hbm %s215_s13, 16, %s269_s2, [#allocation5]  }
  0xfe   :  { %209 = dma.done.wait [#allocation5], 16  }
  0xff   :  { %210 = vsyncadd [#allocation5], 4294967280 }
 0x100   :  { %136 = sfence }
 0x101   :  { %137 = vsyncpa [#allocation4], 1 }
 0x102   :  { %138 = vsyncpa [#allocation7], 1 }
 0x103   :  { %139 = vsyncpa [#allocation5], 1 }

</bundles_post_ra>
